<compile_context>
chip_gen: v7x
topology: tpu7x:2x2x1
jax: 0.10.0
libtpu: 0.0.40
codegen_flags: <defaults>
</compile_context>

<pallas_src>
import functools

import jax
import jax.numpy as jnp
from jax.experimental import pallas as pl
from jax.experimental.pallas import tpu as pltpu

MODULE_FACTOR = 0.5   # scale applied to module(inputs)
INPUT_FACTOR = 1.0    # scale applied to the residual path

_LANE = 128
_SUBLANE = 8


def _round_up(v, m):
    return ((v + m - 1) // m) * m


def _residual_linear_kernel(x_ref, w_ref, b_ref, o_ref, *,
                            module_factor, input_factor, tn, n_tiles):
    # x_ref: [TM, H]   w_ref: [H, TN]   b_ref: [1, TN]   o_ref: [TM, TN]
    x = x_ref[...]
    # Inner module: Linear(hidden, hidden) column-slice on the MXU.
    # Operands stay in the weight dtype (fast bf16 path when requested);
    # accumulation is f32 via preferred_element_type.
    x_mm = x if x.dtype == w_ref.dtype else x.astype(w_ref.dtype)
    y = jnp.dot(x_mm, w_ref[...], preferred_element_type=jnp.float32)
    y = y + b_ref[...].astype(jnp.float32)

    # Residual slice of x matching this output column tile.
    if n_tiles == 1:
        x_res = x
    else:
        j = pl.program_id(1)
        x_res = x_ref[:, pl.ds(pl.multiple_of(j * tn, _LANE), tn)]

    # Fused epilogue: module(x) * module_factor + x * input_factor, no
    # separate f32 residual slab kept live next to the accumulator.
    if input_factor == 1.0:
        out = y * module_factor + x_res.astype(jnp.float32)
    else:
        out = y * module_factor + x_res.astype(jnp.float32) * input_factor
    o_ref[...] = out.astype(o_ref.dtype)


def _pick_tn(h, w_itemsize, weight_block_budget):
    """Largest multiple-of-128 divisor of h whose [h, TN] weight block fits."""
    best = _LANE
    tn = _LANE
    while tn <= h:
        if h % tn == 0 and h * tn * w_itemsize <= weight_block_budget:
            best = tn
        tn += _LANE
    return best


def residual_connection_module(x, w, b, *,
                               module_factor=MODULE_FACTOR,
                               input_factor=INPUT_FACTOR,
                               tm=1024,
                               matmul_in_bf16=None,
                               resident_weight_budget=None,
                               donate_input=False):
    """x: [B, S, H], w: [H, H], b: [H] -> [B, S, H]  (module = Linear(H, H))."""
    B, S, H = x.shape
    M = B * S
    x_b = jnp.dtype(x.dtype).itemsize

    # Optional bf16 matmul operands (auto when activations are bf16): faster
    # MXU path on v5e, halved weight DMA / VMEM residency everywhere.
    if matmul_in_bf16 is None:
        matmul_in_bf16 = (x.dtype == jnp.bfloat16)
    if matmul_in_bf16 and w.dtype != jnp.bfloat16:
        w = w.astype(jnp.bfloat16)
    w_b = jnp.dtype(w.dtype).itemsize

    # Per-generation VMEM budget (v5e/v6e: 128 MiB, v7x: 64 MiB per TC).
    try:
        vmem_cap = int(pltpu.get_tpu_info().vmem_capacity_bytes)
    except Exception:
        vmem_cap = 64 << 20            # conservative (v7x) fallback
    budget = vmem_cap - (8 << 20)      # headroom for compiler scratch

    # Column (N) tiling of the weight only when a fully-resident [H, H] block
    # would hog VMEM (large H on v7x); otherwise keep it resident.
    if resident_weight_budget is None:
        resident_weight_budget = budget // 3
    lane_aligned = (H % _LANE == 0)
    if lane_aligned and H * H * w_b > resident_weight_budget:
        tn = _pick_tn(H, w_b, resident_weight_budget)
    else:
        tn = H
    n_tiles = H // tn

    # Row (M) tiling: big tiles amortize per-step overhead; keep at least two
    # grid steps so v7x's second TensorCore gets work; shrink until the
    # double-buffered footprint fits the per-generation budget.
    tm_eff = min(tm, _round_up(M, _SUBLANE))
    if M >= 2 * _SUBLANE:
        tm_eff = min(tm_eff, _round_up(-(-M // 2), _SUBLANE))

    def footprint(t):
        return (2 * t * H * x_b                      # x tile (double-buffered)
                + 2 * H * tn * w_b                   # weight block
                + 2 * tn * jnp.dtype(b.dtype).itemsize
                + 2 * t * tn * x_b                   # out tile (double-buffered)
                + 4 * t * tn)                        # f32 accumulator / temps

    while tm_eff > _SUBLANE and footprint(tm_eff) > budget:
        tm_eff = _round_up(tm_eff // 2, _SUBLANE)

    grid = (pl.cdiv(M, tm_eff), n_tiles)   # ragged last M block is masked

    vmem_limit = int(1.25 * footprint(tm_eff)) + (8 << 20)
    vmem_limit = min(max(vmem_limit, 32 << 20), budget)

    # No padding / slicing of the [M, H] activation slab: reshape is layout
    # plumbing, ragged blocks and (if H % 128 != 0) masked lane stores are
    # handled by Pallas -> no extra HBM round-trips on this mem-bound op.
    x2d = x.reshape(M, H)
    b2d = b.reshape(1, H)

    kernel = functools.partial(_residual_linear_kernel,
                               module_factor=float(module_factor),
                               input_factor=float(input_factor),
                               tn=tn, n_tiles=n_tiles)

    aliases = {0: 0} if donate_input else {}

    out = pl.pallas_call(
        kernel,
        out_shape=jax.ShapeDtypeStruct((M, H), x.dtype),
        grid_spec=pltpu.PrefetchScalarGridSpec(
            num_scalar_prefetch=0,
            grid=grid,
            in_specs=[
                pl.BlockSpec((tm_eff, H), lambda i, j: (i, 0)),   # x row tile
                pl.BlockSpec((H, tn), lambda i, j: (0, j)),       # weight cols
                pl.BlockSpec((1, tn), lambda i, j: (0, j)),       # bias cols
            ],
            out_specs=pl.BlockSpec((tm_eff, tn), lambda i, j: (i, j)),
        ),
        compiler_params=pltpu.CompilerParams(
            dimension_semantics=("parallel", "parallel"),
            vmem_limit_bytes=int(vmem_limit),
        ),
        input_output_aliases=aliases,
    )(x2d, w, b2d)

    return out.reshape(B, S, H)


if __name__ == "__main__":
    key = jax.random.PRNGKey(0)
    k_x, k_w, k_b = jax.random.split(key, 3)

    def ref_fn(x, w, b, mf=MODULE_FACTOR, inf=INPUT_FACTOR):
        xf = x.astype(jnp.float32)
        return (xf @ w.astype(jnp.float32) + b.astype(jnp.float32)) * mf + xf * inf

    # 1) Small Conformer-ish shape (non-lane-aligned hidden, single N tile).
    batch, seq, hidden = 2, 8, 32
    x = jax.random.normal(k_x, (batch, seq, hidden), dtype=jnp.float32)
    w = jax.random.normal(k_w, (hidden, hidden), dtype=jnp.float32) * 0.05
    b = jax.random.normal(k_b, (hidden,), dtype=jnp.float32) * 0.01
    out = residual_connection_module(x, w, b)
    jax.block_until_ready(out)
    ref = ref_fn(x, w, b)
    assert out.shape == ref.shape
    assert jnp.allclose(out, ref, atol=1e-5, rtol=1e-5), "test 1 mismatch"

    # 2) Ragged last M block + forced weight column tiling (N-tiled path).
    b2_, s2, h2 = 1, 20, 256
    x2 = jax.random.normal(k_x, (b2_, s2, h2), dtype=jnp.float32)
    w2 = jax.random.normal(k_w, (h2, h2), dtype=jnp.float32) * 0.05
    bb2 = jax.random.normal(k_b, (h2,), dtype=jnp.float32) * 0.01
    out2 = residual_connection_module(x2, w2, bb2, resident_weight_budget=1)
    jax.block_until_ready(out2)
    ref2 = ref_fn(x2, w2, bb2)
    assert jnp.allclose(out2, ref2, atol=5e-3, rtol=5e-3), "test 2 mismatch"

    # 3) bf16 activations/weights (fast MXU path), f32 accumulation.
    b3, s3, h3 = 2, 8, 128
    x3 = jax.random.normal(k_x, (b3, s3, h3), dtype=jnp.bfloat16)
    w3 = (jax.random.normal(k_w, (h3, h3), dtype=jnp.float32) * 0.05).astype(jnp.bfloat16)
    bb3 = (jax.random.normal(k_b, (h3,), dtype=jnp.float32) * 0.01).astype(jnp.bfloat16)
    out3 = residual_connection_module(x3, w3, bb3)
    jax.block_until_ready(out3)
    ref3 = ref_fn(x3, w3, bb3)
    assert jnp.allclose(out3.astype(jnp.float32), ref3, atol=6e-2, rtol=6e-2), "test 3 mismatch"

    print("KERNEL_OK")
</pallas_src>

<mosaic_0001>
module attributes {stable_mosaic.version = 11 : i64} {
  func.func @_residual_linear_kernel(%arg0: i32, %arg1: i32, %arg2: memref<8x32xf32, #tpu.memory_space<vmem>>, %arg3: memref<32x32xf32, #tpu.memory_space<vmem>>, %arg4: memref<1x32xf32, #tpu.memory_space<vmem>>, %arg5: memref<8x32xf32, #tpu.memory_space<vmem>>) attributes {dimension_semantics = [#tpu.dimension_semantics<parallel>, #tpu.dimension_semantics<parallel>], iteration_bounds = array<i64: 2, 1>, scalar_prefetch = 0 : i64, scratch_operands = 0 : i64, tpu.core_type = #tpu.core_type<tc>, window_params = [{transform_indices = @transform_0, window_bounds = array<i64: 8, 32>}, {transform_indices = @transform_1, window_bounds = array<i64: 32, 32>}, {transform_indices = @transform_2, window_bounds = array<i64: 1, 32>}, {transform_indices = @transform_3, window_bounds = array<i64: 8, 32>}]} {
    %c0 = arith.constant 0 : index
    %c0_0 = arith.constant 0 : index
    %0 = vector.load %arg2[%c0, %c0_0] : memref<8x32xf32, #tpu.memory_space<vmem>>, vector<8x32xf32>
    %c0_1 = arith.constant 0 : index
    %c0_2 = arith.constant 0 : index
    %1 = vector.load %arg3[%c0_1, %c0_2] : memref<32x32xf32, #tpu.memory_space<vmem>>, vector<32x32xf32>
    %cst = arith.constant dense<0.000000e+00> : vector<8x32xf32>
    %2 = tpu.matmul %0, %1, %cst {dimension_numbers = #tpu.dot_dimension_numbers<[1], [0], [0], [1], [0, 0, 1, 1], [], []>} : vector<8x32xf32>, vector<32x32xf32>, vector<8x32xf32> -> vector<8x32xf32>
    %c0_3 = arith.constant 0 : index
    %c0_4 = arith.constant 0 : index
    %3 = vector.load %arg4[%c0_3, %c0_4] : memref<1x32xf32, #tpu.memory_space<vmem>>, vector<1x32xf32>
    %4 = vector.broadcast %3 : vector<1x32xf32> to vector<8x32xf32>
    %5 = arith.addf %2, %4 : vector<8x32xf32>
    %cst_5 = arith.constant 5.000000e-01 : f32
    %6 = vector.broadcast %cst_5 : f32 to vector<8x32xf32>
    %7 = arith.mulf %5, %6 : vector<8x32xf32>
    %8 = arith.addf %7, %0 : vector<8x32xf32>
    %c0_6 = arith.constant 0 : index
    %c0_7 = arith.constant 0 : index
    %9 = vector.load %arg5[%c0_6, %c0_7] : memref<8x32xf32, #tpu.memory_space<vmem>>, vector<8x32xf32>
    tpu.vector_store %arg5[%c0_6, %c0_7], %8 {strides = array<i32>} : memref<8x32xf32, #tpu.memory_space<vmem>>, vector<8x32xf32>,
    return
  }
  func.func @transform_0(%arg0: i32, %arg1: i32) -> (i32, i32) {
    %c0_i32 = arith.constant 0 : i32
    %c0_i32_0 = arith.constant 0 : i32
    return %arg0, %c0_i32 : i32, i32
  }
  func.func @transform_1(%arg0: i32, %arg1: i32) -> (i32, i32) {
    %c0_i32 = arith.constant 0 : i32
    %c0_i32_0 = arith.constant 0 : i32
    return %c0_i32, %arg1 : i32, i32
  }
  func.func @transform_2(%arg0: i32, %arg1: i32) -> (i32, i32) {
    %c0_i32 = arith.constant 0 : i32
    %c0_i32_0 = arith.constant 0 : i32
    return %c0_i32, %arg1 : i32, i32
  }
  func.func @transform_3(%arg0: i32, %arg1: i32) -> (i32, i32) {
    %c0_i32 = arith.constant 0 : i32
    return %arg0, %arg1 : i32, i32
  }
}

</mosaic_0001>

<bundles_post_ra>
// kernel: tpu_custom_call.1
= control target key start
LH: loop header
LB: loop body
LE: loop exit
PB: predicated region body
PF: predicated region fallthrough
CT: control target
= control target key end

     0   :  { %8 = vsyncpa [#allocation3], 0  ;;  %s952_s0 = inlined_call_operand.hbm [shape: f32[16,32], index: 0, kind: input, shape index: {}]   ;;  %s953_s1 = inlined_call_operand.hbm [shape: f32[32,32], index: 1, kind: input, shape index: {}]   ;;  %s954_s2 = inlined_call_operand.vmem [shape: f32[1,32], index: 2, kind: input, shape index: {}]   ;;  %s955_s3 = inlined_call_operand.hbm [shape: f32[16,32], index: 3, kind: output, shape index: {}]  }
   0x1   :  { %10 = vsyncpa [#allocation3 + $0x1], 0 }
   0x2   :  { %11 = vsyncpa [#allocation6], 0 }
   0x3   :  { %12 = vsyncpa [#allocation4], 0 }
   0x4   :  { %14 = vsyncpa [#allocation4 + $0x1], 0  ;;  %s735_s12 = smov 0   ;;  %s737_s13 = smov 0  }
   0x5   :  { %s739_s14 = smov 0   ;;  %s741_s15 = smov 0  }
   0x6   :  { %s743_s16 = smov 0   ;;  %s745_s17 = smov 0  }
   0x7 LB: > { %s443_s18 = sadd.s32 4294967295, %s705_s17   ;;  %s444_s19 = sadd.s32 4294967294, %s705_s17   ;;  %s705_s17 = sphi %s745_s17, %s20_s17   ;;  %s701_s16 = sphi %s743_s16, %s979_s16   ;;  %s697_s15 = sphi %s741_s15, %s978_s15   ;;  %s693_s14 = sphi %s739_s14, %s977_s14   ;;  %s689_s13 = sphi %s737_s13, %s976_s13   ;;  %s685_s12 = sphi %s735_s12, %s975_s12  }
   0x8   : > { %p52_p0 = scmp.ne.s32.totalorder %s689_s13, %s685_s12  ;;  %p769_p1 = scmp.eq.s32.totalorder %s443_s18, 0 }
   0x9   : > { %p773_p2 = scmp.eq.s32.totalorder %s443_s18, 1  ;;  %p136_p3 = scmp.eq.s32.totalorder %s444_s19, 1 }
   0xa   : > { %s960_s20 = scalar_select %p769_p1, 1, 0 }
   0xb   : > { %s961_s21 = scalar_select %p773_p2, 1, 0 }
   0xc   : > { %p779_p4 = por %p769_p1, %p52_p0  ;;  %p445_p5 = scmp.ge.s32.totalorder %s705_s17, 1 }
   0xd   : > { %p784_p6 = por %p136_p3, %p52_p0  ;;  %p143_p7 = scmp.lt.s32.totalorder %s705_s17, 3 }
   0xe   : > { %s962_s22 = scalar_select %p779_p4, 1, 0 }
   0xf   : > { %s963_s23 = scalar_select %p784_p6, 1, 0 }
  0x10   : > { %p789_p8 = pnand %p445_p5, %p143_p7  ;;  %s707_s25 = smov [#allocation5]  }
  0x11   : > { %s157_s26 = sshll.u32 %s707_s25, 4  ;;  %s32_s28 = sadd.s32 1, %s701_s16  ;;  %s158_s26 = int_to_ptr.vmem [resolvable:$true] %s157_s26 }
  0x12   : > { %s964_s24 = scalar_select %p789_p8, 1, 0 }
  0x13   : > { %p491_p9 = pneg %p789_p8  ;;  %s561_s4 = scalar_lea.hbm %s953_s1, 512 }
  0x14   : > { %p562_p12 = scmp.ne.s32.totalorder %s953_s1, %s561_s4  ;;  %p568_p5 = scmp.lt.u32.totalorder %s561_s4, %s953_s1 }
  0x15   : > { %p798_p11 = pnand %p491_p9, %p769_p1 }
  0x17   : > { %p563_p13 = pneg %p798_p11 }
  0x19   : > { %p564_p0 = pnand %p563_p13, %p562_p12 }
  0x1b   : > { %p565_p3 = pneg %p564_p0 }
  0x1d   : > { %p570_p7 = pnand %p568_p5, %p565_p3 }
  0x1f   : > { %573 = shalt.err (!%p570_p7)
}
  0x20   : > { %s574_s9 = scalar_lea.vmem %s158_s26, 512  ;;  %p582_p1 = scmp.lt.s32.totalorder %s158_s26, %s158_s26 }
  0x21   : > { %p575_p9 = scmp.ne.s32.totalorder %s158_s26, %s574_s9  ;;  %p583_p4 = scmp.lt.s32.totalorder %s574_s9, %s574_s9 }
  0x23   : > { %p577_p10 = pnand %p575_p9, %p563_p13  ;;  %p584_p8 = por %p583_p4, %p582_p1 }
  0x25   : > { %p578_p6 = pneg %p577_p10 }
  0x27   : > { %p585_p2 = pnand %p584_p8, %p578_p6 }
  0x29   : > { %588 = shalt.err (!%p585_p2)
}
  0x2a   : > { %s708_s10 = smov 128   ;;  %s709_s11 = smov 8  }
  0x2b   : > { %494 = dma.hbm_to_vmem [thread:$0]  (!%p798_p11), %s953_s1, 512, %s158_s26, [#allocation6], %s708_s10, %s708_s10, %s709_s11  }
  0x2c   : > { %p34_p1 = scmp.ge.s32.totalorder %s32_s28, 2  ;;  %s39_s25 = sadd.s32 1, %s693_s14 }
  0x2d   : > { %p46_p2 = scmp.ne.s32.totalorder %s693_s14, %s689_s13  ;;  %p47_p4 = scmp.eq.s32.totalorder %s705_s17, 0 }
  0x2e   : > { %s981_s28 = smov (%p34_p1, %s32_s28), 0  ;;  %p967_p8 = scmp.ne.s32.totalorder %s961_s21, 0 }
  0x2f   : > { %p825_p6 = por %p47_p4, %p46_p2  ;;  %s36_s27 = ssub.s32 %s701_s16, %s981_s28 }
  0x30   : > { %p831_p10 = por %p967_p8, %p46_p2  ;;  %p504_p12 = scmp.lt.s32.totalorder %s705_s17, 2 }
  0x31   : > { %p37_p11 = scmp.eq.s32.totalorder %s36_s27, 0  ;;  %s177_s26 = sand.u32 1, %s693_s14  }
  0x32   : > { %s449_s4 = sshll.u32 %s177_s26, 3  ;;  %s450_s6 = sshll.u32 %s701_s16, 7 }
  0x33   : > { %s840_s5 = scalar_select %p37_p11, %s693_s14, %s39_s25  }
  0x34   : > { %s846_s9 = scalar_lea.hbm %s952_s0, %s450_s6  ;;  %s181_s21 = scalar_lea.vmem [#allocation2], %s449_s4 }
  0x35   : > { %s188_s10 = sshll.u32 %s181_s21, 4  ;;  %p852_p13 = pnand %p504_p12, %p825_p6  ;;  %s848_s10 = int_to_ptr.vmem [resolvable:$true] %s188_s10 }
  0x36   : > { %s178_s18 = scalar_lea.sflag [#allocation3], %s177_s26  ;;  %s589_s19 = scalar_lea.hbm %s846_s9, 128 }
  0x37   : > { %p590_p0 = scmp.ne.s32.totalorder %s846_s9, %s589_s19  ;;  %p591_p3 = pneg %p852_p13 }
  0x38   : > { %s594_s4 = scalar_lea.hbm %s952_s0, 256  ;;  %p595_p9 = scmp.lt.u32.totalorder %s846_s9, %s952_s0 }
  0x39   : > { %p592_p5 = pnand %p591_p3, %p590_p0  ;;  %p596_p1 = scmp.lt.u32.totalorder %s594_s4, %s589_s19 }
  0x3a   : > { %p598_p4 = scmp.lt.u32.totalorder %s589_s19, %s846_s9 }
  0x3b   : > { %p593_p7 = pneg %p592_p5  ;;  %p597_p2 = por %p596_p1, %p595_p9 }
  0x3d   : > { %p599_p6 = por %p598_p4, %p597_p2 }
  0x3f   : > { %p600_p8 = pnand %p599_p6, %p593_p7 }
  0x41   : > { %603 = shalt.err (!%p600_p8)
}
  0x42   : > { %s604_s26 = scalar_lea.vmem %s848_s10, 128  ;;  %s710_s7 = smov [#allocation2]  }
  0x43   : > { %p605_p12 = scmp.ne.s32.totalorder %s848_s10, %s604_s26  ;;  %s609_s8 = sshll.u32 %s710_s7, 4  ;;  %s610_s8 = int_to_ptr.vmem [resolvable:$false] %s609_s8 }
  0x44   : > { %s611_s21 = scalar_lea.vmem %s610_s8, 256  ;;  %p612_p5 = scmp.lt.s32.totalorder %s848_s10, %s610_s8 }
  0x45   : > { %p607_p11 = pnand %p605_p12, %p591_p3  ;;  %p613_p9 = scmp.lt.s32.totalorder %s611_s21, %s604_s26 }
  0x47   : > { %p608_p0 = pneg %p607_p11  ;;  %p614_p1 = por %p613_p9, %p612_p5 }
  0x49   : > { %p615_p2 = pnand %p614_p1, %p608_p0 }
  0x4b   : > { %618 = shalt.err (!%p615_p2)
}
  0x4c   : > { %498 = dma.hbm_to_vmem [thread:$0]  (!%p852_p13), %s846_s9, 128, %s848_s10, %s178_s18  }
  0x4d   : > { %p970_p7 = scmp.ne.s32.totalorder %s964_s24, 0 }
  0x4e   : > { %s884_s19 = sand.u32 (!%p970_p7), 1, %s689_s13   ;;  %p971_p3 = scmp.ne.s32.totalorder (!%p970_p7), %s962_s22, 0 }
  0x4f   : > { %197 = sbr.rel (%p970_p7) target bundleno = 333 (0x14d), region = 32  ;;  %s452_s25 = sshll.u32 (!%p970_p7), %s884_s19, 3 }
  0x50   : > { %s200_s27 = scalar_lea.sflag (!%p970_p7), [#allocation3], %s884_s19  ;;  %s203_s4 = scalar_lea.vmem (!%p970_p7), [#allocation2], %s452_s25 }
  0x56   : > { %672 = dma.done.wait (%p971_p3), %s200_s27, 128  }
  0x57   : > { %674 = vsyncadd (%p971_p3), %s200_s27, 4294967168  ;;  %p972_p4 = scmp.ne.s32.totalorder %s960_s20, 0 }
  0x59   : > { %676 = dma.done.wait (%p972_p4), [#allocation6], 512  }
  0x5a   : > { %678 = vsyncadd (%p972_p4), [#allocation6], 4294966784  ;;  %v711_v0 = vmov 0.0|0.0   ;;  %vm712_vm0 = vmmov 0   ;;  %v713_v1 = vmov 0.0   ;;  %v237_v2 = vld [vmem:[#allocation5] sm:$0xff] }
  0x5b   : > { %477 = vmatprep.subr.bf16.mxu0 %v711_v0  ;;  %474 = vmatprep.mubr.msk.f32.mxu0 %vm712_vm0, %v713_v1  ;;  %v238_v3 = vld [vmem:[#allocation5 + $0x8] sm:$0xff]  ;;  %v239_v4 = vld [vmem:[#allocation5 + $0x10] sm:$0xff]  ;;  %v240_v6 = vld [vmem:[#allocation5 + $0x18] sm:$0xff]  ;;  %vm248_vm1 = vcmask 261120   ;;  %s458_s24 = sshll.u32 %s697_s15, 7  ;;  %s232_s9 = scalar_lea.vmem [#allocation7], %s452_s25 }
  0x5c   : > { %v478_v5 = vpack.c.bf16 %v238_v3, %v237_v2  ;;  %v481_v7 = vpack.c.bf16 %v240_v6, %v239_v4  ;;  %v236_v8 = vld [vmem:[%s203_s4] sm:$0xff]  ;;  %s340_s10 = sshll.u32 %s232_s9, 4  ;;  %s903_s29 = scalar_lea.hbm %s955_s3, %s458_s24  ;;  %s905_s10 = int_to_ptr.vmem [resolvable:$true] %s340_s10 }
  0x5d   : > { %v455_v9 = vld [vmem:[%s954_s2] ss:$0 sm:$0xff]  ;;  %s326_s6 = scalar_lea.sflag [#allocation4], %s884_s19  ;;  %s619_s26 = scalar_lea.vmem %s905_s10, 128 }
  0x5e   : > { %479 = vmatpush3.bf16.msra.mxu0 %v478_v5  ;;  %p620_p13 = scmp.ne.s32.totalorder %s905_s10, %s619_s26  ;;  %s714_s15 = smov [#allocation7]  }
  0x5f   : > { %480 = vmatprep.subr.bf16.mxu0 %v711_v0  ;;  %s623_s7 = sshll.u32 %s714_s15, 4  ;;  %s624_s7 = int_to_ptr.vmem [resolvable:$false] %s623_s7 }
  0x60   : > { %p621_p6 = pnand %p620_p13, %p831_p10  ;;  %s625_s8 = scalar_lea.vmem %s624_s7, 256 }
  0x61   : > { %p626_p12 = scmp.lt.s32.totalorder %s905_s10, %s624_s7  ;;  %p627_p11 = scmp.lt.s32.totalorder %s625_s8, %s619_s26 }
  0x62   : > { %482 = vmatpush3.bf16.msra.mxu0 %v481_v7  ;;  %p622_p8 = pneg %p621_p6 }
  0x63   : > { %p628_p0 = por %p627_p11, %p626_p12 }
  0x65   : > { %475 = vmatmul.mubr.msk.f32.vlgmr.msra.gmra.mrb[0].mxu0 %vm248_vm1, %v236_v8  ;;  %p629_p5 = pnand %p628_p0, %p622_p8 }
 0x138   : > { %v318_v10 = vpop.f32.mrb[0].mxu0 }
 0x139   : > { %v319_v11 = vadd.f32 %v455_v9, %v318_v10  ;;  %v476_v12 = vpop.f32.mrb[1].mxu0 }
 0x13b   : > { %v322_v13 = vmul.f32 0.5, %v319_v11 }
 0x13d   : > { %v323_v14 = vadd.f32 %v322_v13, %v236_v8 }
 0x13f   : > { %324 = vst.msk [vmem:[%s232_s9] sm:$0xff] %vm248_vm1, %v323_v14 }
 0x140   : > { %632 = shalt.err (!%p629_p5)
}
 0x141   : > { %s633_s21 = scalar_lea.hbm %s903_s29, 128  ;;  %s637_s27 = scalar_lea.hbm %s955_s3, 256 }
 0x142   : > { %p634_p9 = scmp.ne.s32.totalorder %s903_s29, %s633_s21  ;;  %p638_p7 = scmp.lt.u32.totalorder %s903_s29, %s955_s3 }
 0x143   : > { %p639_p3 = scmp.lt.u32.totalorder %s637_s27, %s633_s21  ;;  %p641_p13 = scmp.lt.u32.totalorder %s633_s21, %s903_s29 }
 0x144   : > { %p635_p1 = pnand %p634_p9, %p831_p10 }
 0x145   : > { %p640_p4 = por %p639_p3, %p638_p7 }
 0x146   : > { %p636_p2 = pneg %p635_p1 }
 0x147   : > { %p642_p6 = por %p641_p13, %p640_p4 }
 0x149   : > { %p643_p8 = pnand %p642_p6, %p636_p2 }
 0x14b   : > { %646 = shalt.err (!%p643_p8)
}
 0x14c   : > { %489 = dma.vmem_to_hbm [thread:$0]  (%p831_p10), %s905_s10, 128, %s903_s29, %s326_s6  }
 0x14d PF: > { %s352_s22 = sand.u32 1, %s685_s12   ;;  %p973_p12 = scmp.ne.s32.totalorder %s963_s23, 0 }
 0x14e   : > { %p974_p11 = scmp.ge.s32.totalorder %s705_s17, 2  ;;  %s353_s24 = scalar_lea.sflag [#allocation4], %s352_s22 }
 0x150   : > { %p500_p0 = pnand %p974_p11, %p973_p12 }
 0x152   : > { %680 = dma.done.wait (!%p500_p0), %s353_s24, 128  }
 0x153   : > { %682 = vsyncadd (!%p500_p0), %s353_s24, 4294967168  ;;  %s20_s17 = sadd.s32 1, %s705_s17   ;;  %s975_s12 = smov %s689_s13 }
 0x154   : > { %p17_p5 = scmp.ge.s32.totalorder %s20_s17, 4   ;;  %s976_s13 = smov %s693_s14 }
 0x155   : > { %s977_s14 = smov %s840_s5  ;;  %s978_s15 = smov %s701_s16 }
 0x156   : > { %s979_s16 = smov %s981_s28  ;;  %19 = sbr.rel (!%p17_p5) target bundleno = 7 (0x7), region = 85 }
 0x15d   :  { %358 = vsyncpa [#allocation3], 1 }
 0x15e   :  { %360 = vsyncpa [#allocation3 + $0x1], 1 }
 0x15f   :  { %361 = vsyncpa [#allocation6], 1 }
 0x160   :  { %362 = vsyncpa [#allocation4], 1 }
 0x161   :  { %364 = vsyncpa [#allocation4 + $0x1], 1 }

</bundles_post_ra>
